<compile_context>
chip_gen: v7x
topology: tpu7x:2x2x1
jax: 0.10.0
libtpu: 0.0.40
codegen_flags: <defaults>
</compile_context>

<pallas_src>
import math
from functools import partial

import jax
import jax.numpy as jnp
from jax.experimental import pallas as pl
from jax.experimental.pallas import tpu as pltpu

# --- bit-code tables (identical to the PyTorch source) -----------------------
BIT_CODE1 = [0, 1, 2, 4, 8, 16, 32, 64]
BIT_CODE2 = [0, 1, 2, 3, 4, 5, 6, 8, 9, 10, 12, 16, 17, 18, 20, 24,
             32, 33, 34, 36, 40, 48, 64, 65, 66, 68, 72, 80, 96]


def _thresholds(code):
    return [0.0] + [(code[i] + code[i + 1]) / 2.0 for i in range(len(code) - 1)] + [128.0]


BIT_CODE1_THR = _thresholds(BIT_CODE1)
BIT_CODE2_THR = _thresholds(BIT_CODE2)


def _snap_tables(log):
    """Cumulative-form snapping tables.

    snapped(a0) = sum_i deltas[i] * (a0 >= cuts[i]) reproduces the PyTorch
    sequential where-loop exactly, INCLUDING |q| == 128 (from q == -128),
    which that loop leaves un-snapped: the extra (cut=128, delta=128-code[-1])
    term maps 128 -> 128.
    """
    code = BIT_CODE1 if log else BIT_CODE2
    thr = _thresholds(code)
    levels = list(code) + [128]
    cuts = tuple(float(t) for t in thr[1:])                              # 29 cuts
    deltas = tuple(float(levels[i] - levels[i - 1]) for i in range(1, len(levels)))
    return cuts, deltas


LANES_WIDE = 1024       # lane-dense slab width (multiple of 128)
MAX_BLOCK_ROWS = 512    # 512 x 1024 f32 = 2 MiB/block; 2 in + 2 out bufs = 8 MiB


# --- Pallas kernel: elementwise bit-pruning hot path --------------------------
def _bitprune_kernel(x_ref, o_ref, *, scale, inv_scale, cuts, deltas):
    x = x_ref[...].astype(jnp.float32)

    # linear_quantize_clamp(x, scale, -128, 127)  (nbits=8, signed)
    q = jnp.clip(jnp.round(x * jnp.float32(scale)), -128.0, 127.0)
    neg = q < 0.0
    a0 = jnp.abs(q)

    # Data-independent cumulative snap: every term tests the ORIGINAL |q|, so
    # the compares/selects are independent and the adds tree-reduce (ILP).
    terms = [jnp.where(a0 >= jnp.float32(c), jnp.float32(d), jnp.float32(0.0))
             for c, d in zip(cuts, deltas)]
    while len(terms) > 1:
        nxt = [terms[i] + terms[i + 1] for i in range(0, len(terms) - 1, 2)]
        if len(terms) & 1:
            nxt.append(terms[-1])
        terms = nxt
    snapped = terms[0]

    q_snap = jnp.where(neg, -snapped, snapped)
    # linear_dequantize: scale is an exact power of two -> multiply is exact.
    o_ref[...] = (q_snap * jnp.float32(inv_scale)).astype(o_ref.dtype)


def bit_prune_pallas(x, scale, log=False):
    """Apply bit_pruning_with_truncation elementwise to x (any shape)."""
    orig_shape = x.shape
    n = x.size
    if n == 0:
        return x
    scale = float(scale)
    inv_scale = 1.0 / scale          # exact: scale is a power of two
    cuts, deltas = _snap_tables(log)

    flat = x.reshape(-1)
    n_bulk = (n // LANES_WIDE) * LANES_WIDE

    pieces = []
    if n_bulk:
        rows = n_bulk // LANES_WIDE
        # Full-array row block when small (always legal); otherwise 512-row
        # blocks (multiple of 8) with a partial last block handled by Pallas.
        block_rows = rows if rows <= MAX_BLOCK_ROWS else MAX_BLOCK_ROWS
        itemsize = jnp.dtype(x.dtype).itemsize
        kernel = partial(_bitprune_kernel, scale=scale, inv_scale=inv_scale,
                         cuts=cuts, deltas=deltas)
        bulk = pl.pallas_call(
            kernel,
            out_shape=jax.ShapeDtypeStruct((rows, LANES_WIDE), x.dtype),
            grid=(pl.cdiv(rows, block_rows),),
            in_specs=[pl.BlockSpec((block_rows, LANES_WIDE), lambda i: (i, 0))],
            out_specs=pl.BlockSpec((block_rows, LANES_WIDE), lambda i: (i, 0)),
            compiler_params=pltpu.CompilerParams(
                dimension_semantics=("parallel",)),
            cost_estimate=pl.CostEstimate(
                flops=100 * n_bulk,
                transcendentals=0,
                bytes_accessed=2 * n_bulk * itemsize),
        )(flat[:n_bulk].reshape(rows, LANES_WIDE))
        pieces.append(bulk.reshape(-1))

    if n_bulk != n:
        # Ragged tail (< 1024 elements): tiny pure-JAX path instead of padding
        # the whole tensor (which would cost an extra HBM read+write).
        pieces.append(_bit_prune_ref(flat[n_bulk:], scale, log))

    out = pieces[0] if len(pieces) == 1 else jnp.concatenate(pieces)
    return out.reshape(orig_shape)


# --- Module wrapper replicating ActBPv2 forward -------------------------------
class ActBPv2Jax:
    def __init__(self, nbits=8, log=False):
        self.nbits = nbits
        self.log = log
        if nbits > 16 or nbits <= 0:
            # radix_position buffer is None -> forward is identity
            self.init_state = None
            self.radix_position = None
        else:
            # deterministic buffer init, same as torch.zeros(1)
            self.init_state = 0.0
            self.radix_position = 0.0

    def __call__(self, x):
        if self.radix_position is None:
            return x
        # Calibration branch (only runs when batch >= 32; eager-only host
        # glue — forces a device sync, so don't trace it under jit).
        if self.init_state == 0 and x.shape[0] >= 32:
            batch_size = x.shape[0]
            k = int(math.sqrt(batch_size))
            topv = jax.lax.top_k(jnp.abs(x).reshape(-1), k)[0][-1]
            il = math.ceil(float(jnp.log2(topv) + 1.0) - 1e-05)
            self.radix_position = float(self.nbits - il)
            self.init_state = 1.0
            # NOTE: the x_int computed here in PyTorch is unused; skipped.
        scale = 2.0 ** self.radix_position
        return bit_prune_pallas(x, scale, self.log)


# --- pure-JAX reference (faithful sequential loop, also used for the tail) ----
def _bit_prune_ref(x, scale, log=False):
    q = jnp.clip(jnp.round(x.astype(jnp.float32) * scale), -128.0, 127.0)
    neg = q < 0.0
    a = jnp.abs(q)
    code = BIT_CODE1 if log else BIT_CODE2
    thr = BIT_CODE1_THR if log else BIT_CODE2_THR
    # Faithful replica of the torch.where loop; |q|==128 is left un-snapped.
    for i in range(len(code)):
        case = (a >= thr[i]) & (a < thr[i + 1])
        a = jnp.where(case, jnp.float32(code[i]), a)
    q = jnp.where(neg, -a, a)
    return (q * (1.0 / scale)).astype(x.dtype)


if __name__ == "__main__":
    key = jax.random.PRNGKey(0)
    # NCHW activation, batch=2 (<32 so calibration is skipped, as in PyTorch
    # with fresh zero buffers); values span roughly [-160, 160] to exercise
    # clamping (including q == -128) and most bit-code buckets.
    x = jax.random.normal(key, (2, 4, 16, 16), dtype=jnp.float32) * 40.0

    module = ActBPv2Jax(nbits=8, log=False)
    out = jax.block_until_ready(module(x))

    ref = _bit_prune_ref(x, 2.0 ** module.radix_position, module.log)
    assert out.shape == x.shape and out.dtype == x.dtype
    assert bool(jnp.all(out == ref)), "mismatch vs reference"

    # Also exercise the ragged-tail path (size not a multiple of 1024).
    x2 = jax.random.normal(jax.random.PRNGKey(1), (3, 5, 7, 11), dtype=jnp.float32) * 40.0
    out2 = jax.block_until_ready(bit_prune_pallas(x2, 1.0, log=False))
    ref2 = _bit_prune_ref(x2, 1.0, False)
    assert bool(jnp.all(out2 == ref2)), "mismatch vs reference (ragged tail)"

    print("KERNEL_OK")
</pallas_src>

<mosaic_0001>
module attributes {stable_mosaic.version = 11 : i64} {
  func.func @_bitprune_kernel(%arg0: i32, %arg1: memref<2x1024xf32, #tpu.memory_space<vmem>>, %arg2: memref<2x1024xf32, #tpu.memory_space<vmem>>) attributes {dimension_semantics = [#tpu.dimension_semantics<parallel>], iteration_bounds = array<i64: 1>, scalar_prefetch = 0 : i64, scratch_operands = 0 : i64, tpu.core_type = #tpu.core_type<tc>, window_params = [{transform_indices = @transform_0, window_bounds = array<i64: 2, 1024>}, {transform_indices = @transform_1, window_bounds = array<i64: 2, 1024>}]} {
    %c0 = arith.constant 0 : index
    %c0_0 = arith.constant 0 : index
    %0 = vector.load %arg1[%c0, %c0_0] : memref<2x1024xf32, #tpu.memory_space<vmem>>, vector<2x1024xf32>
    %cst = arith.constant 1.000000e+00 : f32
    %1 = vector.broadcast %cst : f32 to vector<2x1024xf32>
    %2 = arith.mulf %0, %1 : vector<2x1024xf32>
    %3 = math.roundeven %2 : vector<2x1024xf32>
    %cst_1 = arith.constant -1.280000e+02 : f32
    %cst_2 = arith.constant 1.270000e+02 : f32
    %4 = vector.broadcast %cst_1 : f32 to vector<2x1024xf32>
    %5 = arith.maximumf %4, %3 : vector<2x1024xf32>
    %6 = vector.broadcast %cst_2 : f32 to vector<2x1024xf32>
    %7 = arith.minimumf %6, %5 : vector<2x1024xf32>
    %cst_3 = arith.constant 0.000000e+00 : f32
    %8 = vector.broadcast %cst_3 : f32 to vector<2x1024xf32>
    %9 = arith.cmpf olt, %7, %8 : vector<2x1024xf32>
    %10 = math.absf %7 : vector<2x1024xf32>
    %cst_4 = arith.constant 5.000000e-01 : f32
    %11 = vector.broadcast %cst_4 : f32 to vector<2x1024xf32>
    %12 = arith.cmpf oge, %10, %11 : vector<2x1024xf32>
    %cst_5 = arith.constant 1.000000e+00 : f32
    %cst_6 = arith.constant 0.000000e+00 : f32
    %13 = vector.broadcast %cst_5 : f32 to vector<2x1024xf32>
    %14 = vector.broadcast %cst_6 : f32 to vector<2x1024xf32>
    %15 = arith.select %12, %13, %14 : vector<2x1024xi1>, vector<2x1024xf32>
    %cst_7 = arith.constant 1.500000e+00 : f32
    %16 = vector.broadcast %cst_7 : f32 to vector<2x1024xf32>
    %17 = arith.cmpf oge, %10, %16 : vector<2x1024xf32>
    %cst_8 = arith.constant 1.000000e+00 : f32
    %cst_9 = arith.constant 0.000000e+00 : f32
    %18 = vector.broadcast %cst_8 : f32 to vector<2x1024xf32>
    %19 = vector.broadcast %cst_9 : f32 to vector<2x1024xf32>
    %20 = arith.select %17, %18, %19 : vector<2x1024xi1>, vector<2x1024xf32>
    %cst_10 = arith.constant 2.500000e+00 : f32
    %21 = vector.broadcast %cst_10 : f32 to vector<2x1024xf32>
    %22 = arith.cmpf oge, %10, %21 : vector<2x1024xf32>
    %cst_11 = arith.constant 1.000000e+00 : f32
    %cst_12 = arith.constant 0.000000e+00 : f32
    %23 = vector.broadcast %cst_11 : f32 to vector<2x1024xf32>
    %24 = vector.broadcast %cst_12 : f32 to vector<2x1024xf32>
    %25 = arith.select %22, %23, %24 : vector<2x1024xi1>, vector<2x1024xf32>
    %cst_13 = arith.constant 3.500000e+00 : f32
    %26 = vector.broadcast %cst_13 : f32 to vector<2x1024xf32>
    %27 = arith.cmpf oge, %10, %26 : vector<2x1024xf32>
    %cst_14 = arith.constant 1.000000e+00 : f32
    %cst_15 = arith.constant 0.000000e+00 : f32
    %28 = vector.broadcast %cst_14 : f32 to vector<2x1024xf32>
    %29 = vector.broadcast %cst_15 : f32 to vector<2x1024xf32>
    %30 = arith.select %27, %28, %29 : vector<2x1024xi1>, vector<2x1024xf32>
    %cst_16 = arith.constant 4.500000e+00 : f32
    %31 = vector.broadcast %cst_16 : f32 to vector<2x1024xf32>
    %32 = arith.cmpf oge, %10, %31 : vector<2x1024xf32>
    %cst_17 = arith.constant 1.000000e+00 : f32
    %cst_18 = arith.constant 0.000000e+00 : f32
    %33 = vector.broadcast %cst_17 : f32 to vector<2x1024xf32>
    %34 = vector.broadcast %cst_18 : f32 to vector<2x1024xf32>
    %35 = arith.select %32, %33, %34 : vector<2x1024xi1>, vector<2x1024xf32>
    %cst_19 = arith.constant 5.500000e+00 : f32
    %36 = vector.broadcast %cst_19 : f32 to vector<2x1024xf32>
    %37 = arith.cmpf oge, %10, %36 : vector<2x1024xf32>
    %cst_20 = arith.constant 1.000000e+00 : f32
    %cst_21 = arith.constant 0.000000e+00 : f32
    %38 = vector.broadcast %cst_20 : f32 to vector<2x1024xf32>
    %39 = vector.broadcast %cst_21 : f32 to vector<2x1024xf32>
    %40 = arith.select %37, %38, %39 : vector<2x1024xi1>, vector<2x1024xf32>
    %cst_22 = arith.constant 7.000000e+00 : f32
    %41 = vector.broadcast %cst_22 : f32 to vector<2x1024xf32>
    %42 = arith.cmpf oge, %10, %41 : vector<2x1024xf32>
    %cst_23 = arith.constant 2.000000e+00 : f32
    %cst_24 = arith.constant 0.000000e+00 : f32
    %43 = vector.broadcast %cst_23 : f32 to vector<2x1024xf32>
    %44 = vector.broadcast %cst_24 : f32 to vector<2x1024xf32>
    %45 = arith.select %42, %43, %44 : vector<2x1024xi1>, vector<2x1024xf32>
    %cst_25 = arith.constant 8.500000e+00 : f32
    %46 = vector.broadcast %cst_25 : f32 to vector<2x1024xf32>
    %47 = arith.cmpf oge, %10, %46 : vector<2x1024xf32>
    %cst_26 = arith.constant 1.000000e+00 : f32
    %cst_27 = arith.constant 0.000000e+00 : f32
    %48 = vector.broadcast %cst_26 : f32 to vector<2x1024xf32>
    %49 = vector.broadcast %cst_27 : f32 to vector<2x1024xf32>
    %50 = arith.select %47, %48, %49 : vector<2x1024xi1>, vector<2x1024xf32>
    %cst_28 = arith.constant 9.500000e+00 : f32
    %51 = vector.broadcast %cst_28 : f32 to vector<2x1024xf32>
    %52 = arith.cmpf oge, %10, %51 : vector<2x1024xf32>
    %cst_29 = arith.constant 1.000000e+00 : f32
    %cst_30 = arith.constant 0.000000e+00 : f32
    %53 = vector.broadcast %cst_29 : f32 to vector<2x1024xf32>
    %54 = vector.broadcast %cst_30 : f32 to vector<2x1024xf32>
    %55 = arith.select %52, %53, %54 : vector<2x1024xi1>, vector<2x1024xf32>
    %cst_31 = arith.constant 1.100000e+01 : f32
    %56 = vector.broadcast %cst_31 : f32 to vector<2x1024xf32>
    %57 = arith.cmpf oge, %10, %56 : vector<2x1024xf32>
    %cst_32 = arith.constant 2.000000e+00 : f32
    %cst_33 = arith.constant 0.000000e+00 : f32
    %58 = vector.broadcast %cst_32 : f32 to vector<2x1024xf32>
    %59 = vector.broadcast %cst_33 : f32 to vector<2x1024xf32>
    %60 = arith.select %57, %58, %59 : vector<2x1024xi1>, vector<2x1024xf32>
    %cst_34 = arith.constant 1.400000e+01 : f32
    %61 = vector.broadcast %cst_34 : f32 to vector<2x1024xf32>
    %62 = arith.cmpf oge, %10, %61 : vector<2x1024xf32>
    %cst_35 = arith.constant 4.000000e+00 : f32
    %cst_36 = arith.constant 0.000000e+00 : f32
    %63 = vector.broadcast %cst_35 : f32 to vector<2x1024xf32>
    %64 = vector.broadcast %cst_36 : f32 to vector<2x1024xf32>
    %65 = arith.select %62, %63, %64 : vector<2x1024xi1>, vector<2x1024xf32>
    %cst_37 = arith.constant 1.650000e+01 : f32
    %66 = vector.broadcast %cst_37 : f32 to vector<2x1024xf32>
    %67 = arith.cmpf oge, %10, %66 : vector<2x1024xf32>
    %cst_38 = arith.constant 1.000000e+00 : f32
    %cst_39 = arith.constant 0.000000e+00 : f32
    %68 = vector.broadcast %cst_38 : f32 to vector<2x1024xf32>
    %69 = vector.broadcast %cst_39 : f32 to vector<2x1024xf32>
    %70 = arith.select %67, %68, %69 : vector<2x1024xi1>, vector<2x1024xf32>
    %cst_40 = arith.constant 1.750000e+01 : f32
    %71 = vector.broadcast %cst_40 : f32 to vector<2x1024xf32>
    %72 = arith.cmpf oge, %10, %71 : vector<2x1024xf32>
    %cst_41 = arith.constant 1.000000e+00 : f32
    %cst_42 = arith.constant 0.000000e+00 : f32
    %73 = vector.broadcast %cst_41 : f32 to vector<2x1024xf32>
    %74 = vector.broadcast %cst_42 : f32 to vector<2x1024xf32>
    %75 = arith.select %72, %73, %74 : vector<2x1024xi1>, vector<2x1024xf32>
    %cst_43 = arith.constant 1.900000e+01 : f32
    %76 = vector.broadcast %cst_43 : f32 to vector<2x1024xf32>
    %77 = arith.cmpf oge, %10, %76 : vector<2x1024xf32>
    %cst_44 = arith.constant 2.000000e+00 : f32
    %cst_45 = arith.constant 0.000000e+00 : f32
    %78 = vector.broadcast %cst_44 : f32 to vector<2x1024xf32>
    %79 = vector.broadcast %cst_45 : f32 to vector<2x1024xf32>
    %80 = arith.select %77, %78, %79 : vector<2x1024xi1>, vector<2x1024xf32>
    %cst_46 = arith.constant 2.200000e+01 : f32
    %81 = vector.broadcast %cst_46 : f32 to vector<2x1024xf32>
    %82 = arith.cmpf oge, %10, %81 : vector<2x1024xf32>
    %cst_47 = arith.constant 4.000000e+00 : f32
    %cst_48 = arith.constant 0.000000e+00 : f32
    %83 = vector.broadcast %cst_47 : f32 to vector<2x1024xf32>
    %84 = vector.broadcast %cst_48 : f32 to vector<2x1024xf32>
    %85 = arith.select %82, %83, %84 : vector<2x1024xi1>, vector<2x1024xf32>
    %cst_49 = arith.constant 2.800000e+01 : f32
    %86 = vector.broadcast %cst_49 : f32 to vector<2x1024xf32>
    %87 = arith.cmpf oge, %10, %86 : vector<2x1024xf32>
    %cst_50 = arith.constant 8.000000e+00 : f32
    %cst_51 = arith.constant 0.000000e+00 : f32
    %88 = vector.broadcast %cst_50 : f32 to vector<2x1024xf32>
    %89 = vector.broadcast %cst_51 : f32 to vector<2x1024xf32>
    %90 = arith.select %87, %88, %89 : vector<2x1024xi1>, vector<2x1024xf32>
    %cst_52 = arith.constant 3.250000e+01 : f32
    %91 = vector.broadcast %cst_52 : f32 to vector<2x1024xf32>
    %92 = arith.cmpf oge, %10, %91 : vector<2x1024xf32>
    %cst_53 = arith.constant 1.000000e+00 : f32
    %cst_54 = arith.constant 0.000000e+00 : f32
    %93 = vector.broadcast %cst_53 : f32 to vector<2x1024xf32>
    %94 = vector.broadcast %cst_54 : f32 to vector<2x1024xf32>
    %95 = arith.select %92, %93, %94 : vector<2x1024xi1>, vector<2x1024xf32>
    %cst_55 = arith.constant 3.350000e+01 : f32
    %96 = vector.broadcast %cst_55 : f32 to vector<2x1024xf32>
    %97 = arith.cmpf oge, %10, %96 : vector<2x1024xf32>
    %cst_56 = arith.constant 1.000000e+00 : f32
    %cst_57 = arith.constant 0.000000e+00 : f32
    %98 = vector.broadcast %cst_56 : f32 to vector<2x1024xf32>
    %99 = vector.broadcast %cst_57 : f32 to vector<2x1024xf32>
    %100 = arith.select %97, %98, %99 : vector<2x1024xi1>, vector<2x1024xf32>
    %cst_58 = arith.constant 3.500000e+01 : f32
    %101 = vector.broadcast %cst_58 : f32 to vector<2x1024xf32>
    %102 = arith.cmpf oge, %10, %101 : vector<2x1024xf32>
    %cst_59 = arith.constant 2.000000e+00 : f32
    %cst_60 = arith.constant 0.000000e+00 : f32
    %103 = vector.broadcast %cst_59 : f32 to vector<2x1024xf32>
    %104 = vector.broadcast %cst_60 : f32 to vector<2x1024xf32>
    %105 = arith.select %102, %103, %104 : vector<2x1024xi1>, vector<2x1024xf32>
    %cst_61 = arith.constant 3.800000e+01 : f32
    %106 = vector.broadcast %cst_61 : f32 to vector<2x1024xf32>
    %107 = arith.cmpf oge, %10, %106 : vector<2x1024xf32>
    %cst_62 = arith.constant 4.000000e+00 : f32
    %cst_63 = arith.constant 0.000000e+00 : f32
    %108 = vector.broadcast %cst_62 : f32 to vector<2x1024xf32>
    %109 = vector.broadcast %cst_63 : f32 to vector<2x1024xf32>
    %110 = arith.select %107, %108, %109 : vector<2x1024xi1>, vector<2x1024xf32>
    %cst_64 = arith.constant 4.400000e+01 : f32
    %111 = vector.broadcast %cst_64 : f32 to vector<2x1024xf32>
    %112 = arith.cmpf oge, %10, %111 : vector<2x1024xf32>
    %cst_65 = arith.constant 8.000000e+00 : f32
    %cst_66 = arith.constant 0.000000e+00 : f32
    %113 = vector.broadcast %cst_65 : f32 to vector<2x1024xf32>
    %114 = vector.broadcast %cst_66 : f32 to vector<2x1024xf32>
    %115 = arith.select %112, %113, %114 : vector<2x1024xi1>, vector<2x1024xf32>
    %cst_67 = arith.constant 5.600000e+01 : f32
    %116 = vector.broadcast %cst_67 : f32 to vector<2x1024xf32>
    %117 = arith.cmpf oge, %10, %116 : vector<2x1024xf32>
    %cst_68 = arith.constant 1.600000e+01 : f32
    %cst_69 = arith.constant 0.000000e+00 : f32
    %118 = vector.broadcast %cst_68 : f32 to vector<2x1024xf32>
    %119 = vector.broadcast %cst_69 : f32 to vector<2x1024xf32>
    %120 = arith.select %117, %118, %119 : vector<2x1024xi1>, vector<2x1024xf32>
    %cst_70 = arith.constant 6.450000e+01 : f32
    %121 = vector.broadcast %cst_70 : f32 to vector<2x1024xf32>
    %122 = arith.cmpf oge, %10, %121 : vector<2x1024xf32>
    %cst_71 = arith.constant 1.000000e+00 : f32
    %cst_72 = arith.constant 0.000000e+00 : f32
    %123 = vector.broadcast %cst_71 : f32 to vector<2x1024xf32>
    %124 = vector.broadcast %cst_72 : f32 to vector<2x1024xf32>
    %125 = arith.select %122, %123, %124 : vector<2x1024xi1>, vector<2x1024xf32>
    %cst_73 = arith.constant 6.550000e+01 : f32
    %126 = vector.broadcast %cst_73 : f32 to vector<2x1024xf32>
    %127 = arith.cmpf oge, %10, %126 : vector<2x1024xf32>
    %cst_74 = arith.constant 1.000000e+00 : f32
    %cst_75 = arith.constant 0.000000e+00 : f32
    %128 = vector.broadcast %cst_74 : f32 to vector<2x1024xf32>
    %129 = vector.broadcast %cst_75 : f32 to vector<2x1024xf32>
    %130 = arith.select %127, %128, %129 : vector<2x1024xi1>, vector<2x1024xf32>
    %cst_76 = arith.constant 6.700000e+01 : f32
    %131 = vector.broadcast %cst_76 : f32 to vector<2x1024xf32>
    %132 = arith.cmpf oge, %10, %131 : vector<2x1024xf32>
    %cst_77 = arith.constant 2.000000e+00 : f32
    %cst_78 = arith.constant 0.000000e+00 : f32
    %133 = vector.broadcast %cst_77 : f32 to vector<2x1024xf32>
    %134 = vector.broadcast %cst_78 : f32 to vector<2x1024xf32>
    %135 = arith.select %132, %133, %134 : vector<2x1024xi1>, vector<2x1024xf32>
    %cst_79 = arith.constant 7.000000e+01 : f32
    %136 = vector.broadcast %cst_79 : f32 to vector<2x1024xf32>
    %137 = arith.cmpf oge, %10, %136 : vector<2x1024xf32>
    %cst_80 = arith.constant 4.000000e+00 : f32
    %cst_81 = arith.constant 0.000000e+00 : f32
    %138 = vector.broadcast %cst_80 : f32 to vector<2x1024xf32>
    %139 = vector.broadcast %cst_81 : f32 to vector<2x1024xf32>
    %140 = arith.select %137, %138, %139 : vector<2x1024xi1>, vector<2x1024xf32>
    %cst_82 = arith.constant 7.600000e+01 : f32
    %141 = vector.broadcast %cst_82 : f32 to vector<2x1024xf32>
    %142 = arith.cmpf oge, %10, %141 : vector<2x1024xf32>
    %cst_83 = arith.constant 8.000000e+00 : f32
    %cst_84 = arith.constant 0.000000e+00 : f32
    %143 = vector.broadcast %cst_83 : f32 to vector<2x1024xf32>
    %144 = vector.broadcast %cst_84 : f32 to vector<2x1024xf32>
    %145 = arith.select %142, %143, %144 : vector<2x1024xi1>, vector<2x1024xf32>
    %cst_85 = arith.constant 8.800000e+01 : f32
    %146 = vector.broadcast %cst_85 : f32 to vector<2x1024xf32>
    %147 = arith.cmpf oge, %10, %146 : vector<2x1024xf32>
    %cst_86 = arith.constant 1.600000e+01 : f32
    %cst_87 = arith.constant 0.000000e+00 : f32
    %148 = vector.broadcast %cst_86 : f32 to vector<2x1024xf32>
    %149 = vector.broadcast %cst_87 : f32 to vector<2x1024xf32>
    %150 = arith.select %147, %148, %149 : vector<2x1024xi1>, vector<2x1024xf32>
    %cst_88 = arith.constant 1.280000e+02 : f32
    %151 = vector.broadcast %cst_88 : f32 to vector<2x1024xf32>
    %152 = arith.cmpf oge, %10, %151 : vector<2x1024xf32>
    %cst_89 = arith.constant 3.200000e+01 : f32
    %cst_90 = arith.constant 0.000000e+00 : f32
    %153 = vector.broadcast %cst_89 : f32 to vector<2x1024xf32>
    %154 = vector.broadcast %cst_90 : f32 to vector<2x1024xf32>
    %155 = arith.select %152, %153, %154 : vector<2x1024xi1>, vector<2x1024xf32>
    %156 = arith.addf %15, %20 : vector<2x1024xf32>
    %157 = arith.addf %25, %30 : vector<2x1024xf32>
    %158 = arith.addf %35, %40 : vector<2x1024xf32>
    %159 = arith.addf %45, %50 : vector<2x1024xf32>
    %160 = arith.addf %55, %60 : vector<2x1024xf32>
    %161 = arith.addf %65, %70 : vector<2x1024xf32>
    %162 = arith.addf %75, %80 : vector<2x1024xf32>
    %163 = arith.addf %85, %90 : vector<2x1024xf32>
    %164 = arith.addf %95, %100 : vector<2x1024xf32>
    %165 = arith.addf %105, %110 : vector<2x1024xf32>
    %166 = arith.addf %115, %120 : vector<2x1024xf32>
    %167 = arith.addf %125, %130 : vector<2x1024xf32>
    %168 = arith.addf %135, %140 : vector<2x1024xf32>
    %169 = arith.addf %145, %150 : vector<2x1024xf32>
    %170 = arith.addf %156, %157 : vector<2x1024xf32>
    %171 = arith.addf %158, %159 : vector<2x1024xf32>
    %172 = arith.addf %160, %161 : vector<2x1024xf32>
    %173 = arith.addf %162, %163 : vector<2x1024xf32>
    %174 = arith.addf %164, %165 : vector<2x1024xf32>
    %175 = arith.addf %166, %167 : vector<2x1024xf32>
    %176 = arith.addf %168, %169 : vector<2x1024xf32>
    %177 = arith.addf %170, %171 : vector<2x1024xf32>
    %178 = arith.addf %172, %173 : vector<2x1024xf32>
    %179 = arith.addf %174, %175 : vector<2x1024xf32>
    %180 = arith.addf %176, %155 : vector<2x1024xf32>
    %181 = arith.addf %177, %178 : vector<2x1024xf32>
    %182 = arith.addf %179, %180 : vector<2x1024xf32>
    %183 = arith.addf %181, %182 : vector<2x1024xf32>
    %cst_91 = arith.constant 0.000000e+00 : f32
    %184 = vector.broadcast %cst_91 : f32 to vector<2x1024xf32>
    %185 = arith.subf %184, %183 : vector<2x1024xf32>
    %186 = arith.select %9, %185, %183 : vector<2x1024xi1>, vector<2x1024xf32>
    %cst_92 = arith.constant 1.000000e+00 : f32
    %187 = vector.broadcast %cst_92 : f32 to vector<2x1024xf32>
    %188 = arith.mulf %186, %187 : vector<2x1024xf32>
    %c0_93 = arith.constant 0 : index
    %c0_94 = arith.constant 0 : index
    %189 = vector.load %arg2[%c0_93, %c0_94] : memref<2x1024xf32, #tpu.memory_space<vmem>>, vector<2x1024xf32>
    tpu.vector_store %arg2[%c0_93, %c0_94], %188 {strides = array<i32>} : memref<2x1024xf32, #tpu.memory_space<vmem>>, vector<2x1024xf32>,
    return
  }
  func.func @transform_0(%arg0: i32) -> (i32, i32) {
    %c0_i32 = arith.constant 0 : i32
    %c0_i32_0 = arith.constant 0 : i32
    return %arg0, %c0_i32 : i32, i32
  }
  func.func @transform_1(%arg0: i32) -> (i32, i32) {
    %c0_i32 = arith.constant 0 : i32
    %c0_i32_0 = arith.constant 0 : i32
    return %arg0, %c0_i32 : i32, i32
  }
}

</mosaic_0001>

<bundles_post_ra>
// kernel: tpu_custom_call.1
= control target key start
LH: loop header
LB: loop body
LE: loop exit
PB: predicated region body
PF: predicated region fallthrough
CT: control target
= control target key end

     0   :  { %6 = vsyncpa [#allocation3], 0  ;;  %s459_s0 = inlined_call_operand.hbm [shape: f32[2,1024], index: 0, kind: input, shape index: {}]   ;;  %s460_s1 = inlined_call_operand.hbm [shape: f32[2,1024], index: 1, kind: output, shape index: {}]  }
   0x1   :  { %7 = vsyncpa [#allocation4], 0  ;;  %s279_s6 = smov [#allocation2]   ;;  %s231_s10 = scalar_lea.hbm %s459_s0, 256 }
   0x2   :  { %s14_s7 = sshll.u32 %s279_s6, 4  ;;  %p232_p0 = scmp.ne.s32.totalorder %s459_s0, %s231_s10  ;;  %s15_s7 = int_to_ptr.vmem [resolvable:$true] %s14_s7 }
   0x3   :  { %p235_p1 = scmp.lt.u32.totalorder %s231_s10, %s459_s0 }
   0x5   :  { %p237_p2 = pnand %p235_p1, %p232_p0 }
   0x7   :  { %240 = shalt.err (!%p237_p2)
}
   0x8   :  { %s241_s15 = scalar_lea.vmem %s15_s7, 256  ;;  %p246_p4 = scmp.lt.s32.totalorder %s15_s7, %s15_s7 }
   0x9   :  { %p242_p3 = scmp.ne.s32.totalorder %s15_s7, %s241_s15  ;;  %p247_p5 = scmp.lt.s32.totalorder %s241_s15, %s241_s15 }
   0xb   :  { %p248_p6 = por %p247_p5, %p246_p4 }
   0xd   :  { %p249_p7 = pnand %p248_p6, %p242_p3 }
   0xf   :  { %252 = shalt.err (!%p249_p7)
}
  0x10   :  { %17 = dma.hbm_to_vmem [thread:$0]  %s459_s0, 256, %s15_s7, [#allocation3]  }
  0x11   :  { %275 = dma.done.wait [#allocation3], 256  }
  0x12   :  { %276 = vsyncadd [#allocation3], 4294967040  ;;  %v21_v0 = vld [vmem:[#allocation2] sm:$0xff]  ;;  %v22_v1 = vld [vmem:[#allocation2 + $0x8] sm:$0xff]  ;;  %v280_v10 = vmov 0.0   ;;  %s281_s0 = smov [#allocation5]  }
  0x13   :  { %v226_v2 = vround.rtne.f32 %v21_v0  ;;  %v227_v3 = vround.rtne.f32 %v22_v1  ;;  %s217_s18 = sshll.u32 %s281_s0, 4  ;;  %s218_s18 = int_to_ptr.vmem [resolvable:$true] %s217_s18 }
  0x14   :  { %s253_s19 = scalar_lea.vmem %s218_s18, 256  ;;  %p258_p9 = scmp.lt.s32.totalorder %s218_s18, %s218_s18 }
  0x15   :  { %v304_v4 = vmax.f32 %v226_v2, -128.0  ;;  %v306_v5 = vmax.f32 %v227_v3, -128.0  ;;  %p254_p8 = scmp.ne.s32.totalorder %s218_s18, %s253_s19  ;;  %p259_p10 = scmp.lt.s32.totalorder %s253_s19, %s253_s19 }
  0x17   :  { %v27_v6 = vmin.f32 %v304_v4, 127.0  ;;  %v28_v7 = vmin.f32 %v306_v5, 127.0  ;;  %p260_p11 = por %p259_p10, %p258_p9 }
  0x19   :  { %v312_v8 = vand.u32 2147483647, %v27_v6  ;;  %v316_v9 = vand.u32 2147483647, %v28_v7  ;;  %p261_p12 = pnand %p260_p11, %p254_p8 }
  0x1b   :  { %vm33_vm0 = vcmp.ge.f32.partialorder %v312_v8, 0.5  ;;  %vm37_vm1 = vcmp.ge.f32.partialorder %v312_v8, 1.5  ;;  %vm41_vm2 = vcmp.ge.f32.partialorder %v312_v8, 2.5  ;;  %vm45_vm3 = vcmp.ge.f32.partialorder %v312_v8, 3.5 }
  0x1c   :  { %v35_v11 = vsel %vm33_vm0, 1.0, %v280_v10  ;;  %v39_v12 = vsel %vm37_vm1, 1.0, %v280_v10  ;;  %v43_v13 = vsel %vm41_vm2, 1.0, %v280_v10  ;;  %v47_v14 = vsel %vm45_vm3, 1.0, %v280_v10 }
  0x1d   :  { %vm49_vm4 = vcmp.ge.f32.partialorder %v312_v8, 4.5  ;;  %vm53_vm5 = vcmp.ge.f32.partialorder %v312_v8, 5.5  ;;  %vm57_vm6 = vcmp.ge.f32.partialorder %v312_v8, 7.0  ;;  %vm61_vm7 = vcmp.ge.f32.partialorder %v312_v8, 8.5 }
  0x1e   :  { %v51_v15 = vsel %vm49_vm4, 1.0, %v280_v10  ;;  %v55_v16 = vsel %vm53_vm5, 1.0, %v280_v10  ;;  %v59_v17 = vsel %vm57_vm6, 2.0, %v280_v10  ;;  %v63_v18 = vsel %vm61_vm7, 1.0, %v280_v10 }
  0x1f   :  { %vm65_vm8 = vcmp.ge.f32.partialorder %v312_v8, 9.5  ;;  %vm69_vm9 = vcmp.ge.f32.partialorder %v312_v8, 11.0  ;;  %vm73_vm10 = vcmp.ge.f32.partialorder %v312_v8, 14.0  ;;  %vm77_vm11 = vcmp.ge.f32.partialorder %v312_v8, 16.5 }
  0x20   :  { %v67_v19 = vsel %vm65_vm8, 1.0, %v280_v10  ;;  %v71_v20 = vsel %vm69_vm9, 2.0, %v280_v10  ;;  %v75_v21 = vsel %vm73_vm10, 4.0, %v280_v10  ;;  %v79_v22 = vsel %vm77_vm11, 1.0, %v280_v10 }
  0x21   :  { %vm81_vm12 = vcmp.ge.f32.partialorder %v312_v8, 17.5  ;;  %vm85_vm13 = vcmp.ge.f32.partialorder %v312_v8, 19.0  ;;  %vm89_vm14 = vcmp.ge.f32.partialorder %v312_v8, 22.0  ;;  %vm93_vm15 = vcmp.ge.f32.partialorder %v312_v8, 28.0 }
  0x22   :  { %v83_v23 = vsel %vm81_vm12, 1.0, %v280_v10  ;;  %v87_v24 = vsel %vm85_vm13, 2.0, %v280_v10  ;;  %v91_v25 = vsel %vm89_vm14, 4.0, %v280_v10  ;;  %v95_v26 = vsel %vm93_vm15, 8.0, %v280_v10 }
  0x23   :  { %vm97_vm0 = vcmp.ge.f32.partialorder %v312_v8, 32.5  ;;  %vm101_vm1 = vcmp.ge.f32.partialorder %v312_v8, 33.5  ;;  %vm105_vm2 = vcmp.ge.f32.partialorder %v312_v8, 35.0  ;;  %vm109_vm3 = vcmp.ge.f32.partialorder %v312_v8, 38.0 }
  0x24   :  { %v99_v27 = vsel %vm97_vm0, 1.0, %v280_v10  ;;  %v103_v28 = vsel %vm101_vm1, 1.0, %v280_v10  ;;  %v107_v29 = vsel %vm105_vm2, 2.0, %v280_v10  ;;  %v111_v30 = vsel %vm109_vm3, 4.0, %v280_v10 }
  0x25   :  { %vm113_vm4 = vcmp.ge.f32.partialorder %v312_v8, 44.0  ;;  %vm117_vm5 = vcmp.ge.f32.partialorder %v312_v8, 56.0  ;;  %vm121_vm6 = vcmp.ge.f32.partialorder %v312_v8, 64.5  ;;  %vm125_vm7 = vcmp.ge.f32.partialorder %v312_v8, 65.5 }
  0x26   :  { %v115_v31 = vsel %vm113_vm4, 8.0, %v280_v10  ;;  %v119_v32 = vsel %vm117_vm5, 16.0, %v280_v10  ;;  %v123_v33 = vsel %vm121_vm6, 1.0, %v280_v10  ;;  %v127_v34 = vsel %vm125_vm7, 1.0, %v280_v10 }
  0x27   :  { %vm129_vm8 = vcmp.ge.f32.partialorder %v312_v8, 67.0  ;;  %vm133_vm9 = vcmp.ge.f32.partialorder %v312_v8, 70.0  ;;  %vm137_vm10 = vcmp.ge.f32.partialorder %v312_v8, 76.0  ;;  %vm141_vm11 = vcmp.ge.f32.partialorder %v312_v8, 88.0 }
  0x28   :  { %v131_v35 = vsel %vm129_vm8, 2.0, %v280_v10  ;;  %v135_v36 = vsel %vm133_vm9, 4.0, %v280_v10  ;;  %v139_v37 = vsel %vm137_vm10, 8.0, %v280_v10  ;;  %v143_v38 = vsel %vm141_vm11, 16.0, %v280_v10 }
  0x29   :  { %vm145_vm12 = vcmp.ge.f32.partialorder %v312_v8, 128.0  ;;  %v149_v39 = vadd.f32 %v39_v12, %v35_v11  ;;  %v151_v40 = vadd.f32 %v47_v14, %v43_v13  ;;  %v153_v41 = vadd.f32 %v55_v16, %v51_v15 }
  0x2a   :  { %v147_v42 = vsel %vm145_vm12, 32.0, %v280_v10  ;;  %v155_v43 = vadd.f32 %v63_v18, %v59_v17  ;;  %v157_v44 = vadd.f32 %v71_v20, %v67_v19  ;;  %v159_v45 = vadd.f32 %v79_v22, %v75_v21 }
  0x2b   :  { %v161_v46 = vadd.f32 %v87_v24, %v83_v23  ;;  %v163_v47 = vadd.f32 %v95_v26, %v91_v25  ;;  %v165_v48 = vadd.f32 %v103_v28, %v99_v27  ;;  %v167_v49 = vadd.f32 %v111_v30, %v107_v29 }
  0x2c   :  { %v169_v50 = vadd.f32 %v119_v32, %v115_v31  ;;  %v171_v51 = vadd.f32 %v127_v34, %v123_v33  ;;  %v173_v52 = vadd.f32 %v135_v36, %v131_v35  ;;  %v175_v53 = vadd.f32 %v143_v38, %v139_v37 }
  0x2d   :  { %vm378_vm13 = vcmp.lt.f32.partialorder %v27_v6, 0.0  ;;  %v177_v55 = vadd.f32 %v151_v40, %v149_v39  ;;  %v179_v56 = vadd.f32 %v155_v43, %v153_v41  ;;  %v181_v57 = vadd.f32 %v159_v45, %v157_v44 }
  0x2e   :  { %v183_v58 = vadd.f32 %v163_v47, %v161_v46  ;;  %v185_v59 = vadd.f32 %v167_v49, %v165_v48  ;;  %v187_v60 = vadd.f32 %v171_v51, %v169_v50  ;;  %v189_v61 = vadd.f32 %v175_v53, %v173_v52 }
  0x2f   :  { %vm34_vm14 = vcmp.ge.f32.partialorder %v316_v9, 0.5  ;;  %v191_v62 = vadd.f32 %v179_v56, %v177_v55  ;;  %vm38_vm15 = vcmp.ge.f32.partialorder %v316_v9, 1.5  ;;  %vm42_vm0 = vcmp.ge.f32.partialorder %v316_v9, 2.5 }
  0x30   :  { %v193_v63 = vadd.f32 %v183_v58, %v181_v57  ;;  %v384_v0 = vsel %vm34_vm14, 1.0, %v280_v10  ;;  %v195_v1 = vadd.f32 %v187_v60, %v185_v59  ;;  %v197_v2 = vadd.f32 %v189_v61, %v147_v42 }
  0x31   :  { %v40_v3 = vsel %vm38_vm15, 1.0, %v280_v10  ;;  %v44_v6 = vsel %vm42_vm0, 1.0, %v280_v10  ;;  %vm46_vm1 = vcmp.ge.f32.partialorder %v316_v9, 3.5  ;;  %vm50_vm2 = vcmp.ge.f32.partialorder %v316_v9, 4.5 }
  0x32   :  { %v199_v4 = vadd.f32 %v193_v63, %v191_v62  ;;  %v201_v8 = vadd.f32 %v197_v2, %v195_v1  ;;  %v48_v11 = vsel %vm46_vm1, 1.0, %v280_v10  ;;  %v52_v12 = vsel %vm50_vm2, 1.0, %v280_v10 }
  0x33   :  { %vm54_vm3 = vcmp.ge.f32.partialorder %v316_v9, 5.5  ;;  %vm58_vm4 = vcmp.ge.f32.partialorder %v316_v9, 7.0  ;;  %vm62_vm5 = vcmp.ge.f32.partialorder %v316_v9, 8.5  ;;  %vm66_vm6 = vcmp.ge.f32.partialorder %v316_v9, 9.5 }
  0x34   :  { %v56_v13 = vsel %vm54_vm3, 1.0, %v280_v10  ;;  %v203_v14 = vadd.f32 %v201_v8, %v199_v4  ;;  %v60_v15 = vsel %vm58_vm4, 2.0, %v280_v10  ;;  %v64_v16 = vsel %vm62_vm5, 1.0, %v280_v10 }
  0x35   :  { %v68_v17 = vsel %vm66_vm6, 1.0, %v280_v10  ;;  %vm70_vm7 = vcmp.ge.f32.partialorder %v316_v9, 11.0  ;;  %vm74_vm8 = vcmp.ge.f32.partialorder %v316_v9, 14.0  ;;  %vm78_vm9 = vcmp.ge.f32.partialorder %v316_v9, 16.5 }
  0x36   :  { %vm82_vm10 = vcmp.ge.f32.partialorder %v316_v9, 17.5  ;;  %v205_v18 = vsub.f32 0.0, %v203_v14  ;;  %v72_v19 = vsel %vm70_vm7, 2.0, %v280_v10  ;;  %v76_v20 = vsel %vm74_vm8, 4.0, %v280_v10 }
  0x37   :  { %v80_v21 = vsel %vm78_vm9, 1.0, %v280_v10  ;;  %v84_v22 = vsel %vm82_vm10, 1.0, %v280_v10  ;;  %vm86_vm11 = vcmp.ge.f32.partialorder %v316_v9, 19.0  ;;  %vm90_vm12 = vcmp.ge.f32.partialorder %v316_v9, 22.0 }
  0x38   :  { %vm94_vm14 = vcmp.ge.f32.partialorder %v316_v9, 28.0  ;;  %v207_v23 = vsel %vm378_vm13, %v205_v18, %v203_v14  ;;  %v88_v24 = vsel %vm86_vm11, 2.0, %v280_v10  ;;  %v92_v25 = vsel %vm90_vm12, 4.0, %v280_v10 }
  0x39   :  { %v96_v26 = vsel %vm94_vm14, 8.0, %v280_v10  ;;  %209 = vst [vmem:[#allocation5] sm:$0xff] %v207_v23  ;;  %vm98_vm15 = vcmp.ge.f32.partialorder %v316_v9, 32.5  ;;  %vm102_vm0 = vcmp.ge.f32.partialorder %v316_v9, 33.5  ;;  %vm106_vm1 = vcmp.ge.f32.partialorder %v316_v9, 35.0 }
  0x3a   :  { %vm110_vm2 = vcmp.ge.f32.partialorder %v316_v9, 38.0  ;;  %v100_v27 = vsel %vm98_vm15, 1.0, %v280_v10  ;;  %v104_v28 = vsel %vm102_vm0, 1.0, %v280_v10  ;;  %v108_v29 = vsel %vm106_vm1, 2.0, %v280_v10 }
  0x3b   :  { %v112_v30 = vsel %vm110_vm2, 4.0, %v280_v10  ;;  %vm114_vm13 = vcmp.ge.f32.partialorder %v316_v9, 44.0  ;;  %vm118_vm3 = vcmp.ge.f32.partialorder %v316_v9, 56.0  ;;  %vm122_vm4 = vcmp.ge.f32.partialorder %v316_v9, 64.5 }
  0x3c   :  { %vm126_vm5 = vcmp.ge.f32.partialorder %v316_v9, 65.5  ;;  %v116_v31 = vsel %vm114_vm13, 8.0, %v280_v10  ;;  %v120_v32 = vsel %vm118_vm3, 16.0, %v280_v10  ;;  %v124_v33 = vsel %vm122_vm4, 1.0, %v280_v10 }
  0x3d   :  { %v128_v34 = vsel %vm126_vm5, 1.0, %v280_v10  ;;  %vm130_vm6 = vcmp.ge.f32.partialorder %v316_v9, 67.0  ;;  %vm134_vm7 = vcmp.ge.f32.partialorder %v316_v9, 70.0  ;;  %vm138_vm8 = vcmp.ge.f32.partialorder %v316_v9, 76.0 }
  0x3e   :  { %vm142_vm9 = vcmp.ge.f32.partialorder %v316_v9, 88.0  ;;  %v132_v35 = vsel %vm130_vm6, 2.0, %v280_v10  ;;  %v136_v36 = vsel %vm134_vm7, 4.0, %v280_v10  ;;  %v140_v37 = vsel %vm138_vm8, 8.0, %v280_v10 }
  0x3f   :  { %v144_v38 = vsel %vm142_vm9, 16.0, %v280_v10  ;;  %vm146_vm10 = vcmp.ge.f32.partialorder %v316_v9, 128.0  ;;  %v150_v39 = vadd.f32 %v40_v3, %v384_v0  ;;  %v152_v40 = vadd.f32 %v48_v11, %v44_v6 }
  0x40   :  { %v154_v41 = vadd.f32 %v56_v13, %v52_v12  ;;  %v148_v42 = vsel %vm146_vm10, 32.0, %v280_v10  ;;  %v156_v43 = vadd.f32 %v64_v16, %v60_v15  ;;  %v158_v44 = vadd.f32 %v72_v19, %v68_v17 }
  0x41   :  { %v160_v45 = vadd.f32 %v80_v21, %v76_v20  ;;  %v162_v46 = vadd.f32 %v88_v24, %v84_v22  ;;  %v164_v47 = vadd.f32 %v96_v26, %v92_v25  ;;  %v166_v48 = vadd.f32 %v104_v28, %v100_v27 }
  0x42   :  { %v168_v49 = vadd.f32 %v112_v30, %v108_v29  ;;  %v170_v50 = vadd.f32 %v120_v32, %v116_v31  ;;  %v172_v51 = vadd.f32 %v128_v34, %v124_v33  ;;  %v174_v52 = vadd.f32 %v136_v36, %v132_v35 }
  0x43   :  { %v176_v53 = vadd.f32 %v144_v38, %v140_v37  ;;  %v178_v54 = vadd.f32 %v152_v40, %v150_v39  ;;  %v180_v55 = vadd.f32 %v156_v43, %v154_v41  ;;  %v182_v9 = vadd.f32 %v160_v45, %v158_v44 }
  0x44   :  { %v184_v56 = vadd.f32 %v164_v47, %v162_v46  ;;  %v186_v57 = vadd.f32 %v168_v49, %v166_v48  ;;  %v188_v58 = vadd.f32 %v172_v51, %v170_v50  ;;  %vm30_vm11 = vcmp.lt.f32.partialorder %v28_v7, 0.0 }
  0x45   :  { %v190_v59 = vadd.f32 %v176_v53, %v174_v52  ;;  %v192_v60 = vadd.f32 %v180_v55, %v178_v54 }
  0x46   :  { %v194_v10 = vadd.f32 %v184_v56, %v182_v9  ;;  %v196_v61 = vadd.f32 %v188_v58, %v186_v57 }
  0x47   :  { %v198_v62 = vadd.f32 %v190_v59, %v148_v42 }
  0x48   :  { %v200_v63 = vadd.f32 %v194_v10, %v192_v60 }
  0x49   :  { %v202_v0 = vadd.f32 %v198_v62, %v196_v61 }
  0x4b   :  { %v204_v1 = vadd.f32 %v202_v0, %v200_v63 }
  0x4d   :  { %v206_v2 = vsub.f32 0.0, %v204_v1 }
  0x4f   :  { %v208_v3 = vsel %vm30_vm11, %v206_v2, %v204_v1 }
  0x50   :  { %210 = vst [vmem:[#allocation5 + $0x8] sm:$0xff] %v208_v3 }
  0x51   :  { %264 = shalt.err (!%p261_p12)
}
  0x52   :  { %s265_s22 = scalar_lea.hbm %s460_s1, 256 }
  0x53   :  { %p266_p13 = scmp.ne.s32.totalorder %s460_s1, %s265_s22  ;;  %p269_p0 = scmp.lt.u32.totalorder %s265_s22, %s460_s1 }
  0x55   :  { %p271_p1 = pnand %p269_p0, %p266_p13 }
  0x57   :  { %274 = shalt.err (!%p271_p1)
}
  0x58   :  { %220 = dma.vmem_to_hbm [thread:$0]  %s218_s18, 256, %s460_s1, [#allocation4]  }
  0x59   :  { %277 = dma.done.wait [#allocation4], 256  }
  0x5a   :  { %278 = vsyncadd [#allocation4], 4294967040 }
  0x5b   :  { %224 = vsyncpa [#allocation3], 1 }
  0x5c   :  { %225 = vsyncpa [#allocation4], 1 }

</bundles_post_ra>
